<compile_context>
chip_gen: v6e
topology: v6e:2x2x1
jax: 0.10.0
libtpu: 0.0.40
codegen_flags: <defaults>
</compile_context>

<pallas_src>
import functools

import jax
import jax.numpy as jnp
from jax.experimental import pallas as pl
from jax.experimental.pallas import tpu as pltpu


def attention_kernel(enc_ref, attd_ref, we_ref, wf_ref, out_ref, *,
                     mm_dtype, approx_recip):
    TB, P, E = enc_ref.shape
    A = we_ref.shape[1]

    enc = enc_ref[...]                                   # (TB, P, E) input dtype
    enc_f32 = enc.astype(jnp.float32)                    # free when input is f32

    # encoder_att(encoder_out): one tall (TB*P, E) @ (E, A) MXU matmul.
    # Only the MXU operand is cast to the matmul dtype (in-registers).
    att_e = jnp.dot(
        enc.astype(mm_dtype).reshape(TB * P, E), we_ref[...],
        preferred_element_type=jnp.float32).reshape(TB, P, A)

    # relu(decoder_att(h) + encoder_att(enc)); decoder proj (+ both biases)
    # precomputed in the wrapper, b_full dropped (softmax shift-invariance).
    w = jnp.maximum(att_e + attd_ref[...], 0.0)          # (TB, P, A) f32

    # full_att(w): N=1 projection as VPU multiply + lane (XLU) reduce.
    scores = jnp.sum(w * wf_ref[...], axis=-1, keepdims=True)      # (TB, P, 1)

    # Numerically-stable softmax, normalization deferred past the reduction.
    m = jnp.max(scores, axis=1, keepdims=True)
    e = jnp.exp(scores - m)                                         # (TB, P, 1)

    # bmm(encoder_out^T, softmax(w)).squeeze(2):
    # unnormalized weighted sum (broadcast-mul + cross-sublane reduce),
    # then a single per-row reciprocal scale (EUP slot).
    acc = jnp.sum(e * enc_f32, axis=1)                              # (TB, E) f32
    denom = jnp.sum(e, axis=1)                                      # (TB, 1) f32
    out_ref[...] = acc * pl.reciprocal(denom, approx=approx_recip)


def _vmem_capacity_bytes(default=128 << 20):
    try:
        info = pltpu.get_tpu_info()
        cap = getattr(info, "vmem_capacity_bytes", None)
        if cap:
            return int(cap)
    except Exception:
        pass
    return default


def _working_set_bytes(tb, P, E, A, enc_itemsize, mm_itemsize):
    """Conservative per-step VMEM working set (double-buffered pipeline)."""
    enc_blocks = 2 * tb * P * E * enc_itemsize       # encoder_out blocks (2-buf)
    enc_cast = tb * P * E * mm_itemsize              # in-kernel MXU-operand cast
    att_interm = 2 * tb * P * A * 4                  # att_e + relu(w) f32 temps
    attd_blocks = 2 * tb * A * 4                     # precomputed decoder proj
    weights = 2 * E * A * mm_itemsize + 2 * A * 4    # W_enc (2 bufs) + W_full row
    outs = 2 * tb * E * 4                            # output blocks (2-buf)
    small = 4 * tb * P * 4                           # scores / exp / softmax temps
    return enc_blocks + enc_cast + att_interm + attd_blocks + weights + outs + small


def _pick_tb(B, P, E, A, enc_itemsize, mm_itemsize, budget_bytes):
    """Pick the batch tile: must fit the VMEM budget, prefer MXU-aligned
    M = TB*P (multiple of 256), an even (or single) step count for megacore
    balance, then the largest TB (amortizes ~0.35 us/step overhead)."""
    best, best_key = 1, None
    for tb in range(1, B + 1):
        if B % tb:
            continue
        steps = B // tb
        fits = _working_set_bytes(tb, P, E, A, enc_itemsize, mm_itemsize) <= budget_bytes
        mxu_m = (tb * P) % 256 == 0
        balanced = (steps % 2 == 0) or (steps == 1)
        key = (fits, mxu_m, balanced, tb)
        if best_key is None or key > best_key:
            best, best_key = tb, key
    return best


def attention_forward(encoder_out, decoder_hidden, params, *, use_bf16=True):
    """encoder_out: (B, P, E); decoder_hidden: (B, 1, D); returns (B, E) f32."""
    B, P, E = encoder_out.shape
    Dh = decoder_hidden.shape[-1]
    we, be, wd, bd, wf, bf = params
    A = we.shape[1]
    del bf  # softmax is shift-invariant: b_full cannot affect the output.

    mm_dtype = jnp.bfloat16 if use_bf16 else jnp.float32
    enc_itemsize = jnp.dtype(encoder_out.dtype).itemsize
    mm_itemsize = jnp.dtype(mm_dtype).itemsize

    # Hoist the decoder projection out of the grid (one well-shaped XLA matmul)
    # and fold BOTH biases into it: relu(h@Wd + bd + enc@We + be).
    att_d = (decoder_hidden.reshape(B, Dh).astype(jnp.float32) @ wd
             + (bd + be)).reshape(B, 1, A)

    we_in = we.astype(mm_dtype)                       # tiny one-time weight cast
    wf_row = wf.reshape(1, A).astype(jnp.float32)     # full_att weight as a row

    # Generation-aware tiling / scoped-VMEM sizing.
    vmem_cap = _vmem_capacity_bytes()                 # 128 MiB v5e/v6e, 64 MiB v7x
    budget = int(min(0.45 * vmem_cap, 40 << 20))
    TB = _pick_tb(B, P, E, A, enc_itemsize, mm_itemsize, budget)
    working_set = _working_set_bytes(TB, P, E, A, enc_itemsize, mm_itemsize)
    vmem_limit = int(min(max(working_set + (4 << 20), 32 << 20), 0.75 * vmem_cap))

    cost = pl.CostEstimate(
        flops=2 * B * P * E * A + 4 * B * P * A + 2 * B * P * E,
        transcendentals=B * P,
        bytes_accessed=(B * P * E * enc_itemsize + E * A * mm_itemsize
                        + B * A * 4 + B * E * 4),
    )

    grid_spec = pltpu.PrefetchScalarGridSpec(
        num_scalar_prefetch=0,
        grid=(B // TB,),
        in_specs=[
            pl.BlockSpec((TB, P, E), lambda b: (b, 0, 0)),   # encoder_out (f32)
            pl.BlockSpec((TB, 1, A), lambda b: (b, 0, 0)),   # decoder proj + biases
            pl.BlockSpec((E, A),     lambda b: (0, 0)),      # W_enc (grid-invariant)
            pl.BlockSpec((1, A),     lambda b: (0, 0)),      # W_full (row)
        ],
        out_specs=pl.BlockSpec((TB, E), lambda b: (b, 0)),
    )

    kernel = functools.partial(
        attention_kernel, mm_dtype=mm_dtype, approx_recip=use_bf16)

    return pl.pallas_call(
        kernel,
        out_shape=jax.ShapeDtypeStruct((B, E), jnp.float32),
        grid_spec=grid_spec,
        compiler_params=pltpu.CompilerParams(
            dimension_semantics=("parallel",),
            vmem_limit_bytes=vmem_limit),
        cost_estimate=cost,
    )(encoder_out, att_d, we_in, wf_row)


def init_params(key, encoder_dim, decoder_dim, attention_dim):
    """Deterministic nn.Linear-style (uniform +-1/sqrt(fan_in)) init."""
    ks = jax.random.split(key, 6)

    def lin(kw, kb, fan_in, fan_out):
        bound = 1.0 / jnp.sqrt(fan_in)
        w = jax.random.uniform(kw, (fan_in, fan_out), jnp.float32, -bound, bound)
        b = jax.random.uniform(kb, (fan_out,), jnp.float32, -bound, bound)
        return w, b

    we, be = lin(ks[0], ks[1], encoder_dim, attention_dim)
    wd, bd = lin(ks[2], ks[3], decoder_dim, attention_dim)
    wf, bf = lin(ks[4], ks[5], attention_dim, 1)
    return we, be, wd, bd, wf, bf


def attention_reference(encoder_out, decoder_hidden, params):
    """Pure-JAX mirror of the PyTorch forward for validation."""
    we, be, wd, bd, wf, bf = params
    att_e = encoder_out @ we + be                         # (B, P, A)
    att_d = decoder_hidden @ wd + bd                      # (B, 1, A)
    w = jnp.maximum(att_d + att_e, 0.0)
    scores = w @ wf + bf                                  # (B, P, 1)
    alpha = jax.nn.softmax(scores, axis=1)                # softmax over pixels
    out = jnp.einsum("bpe,bpo->beo", encoder_out, alpha)  # (B, E, 1)
    return jnp.squeeze(out, 2)                            # (B, E)


if __name__ == "__main__":
    B, P = 16, 16             # batch, num_pixels
    E, D, A = 128, 128, 128   # encoder_dim, decoder_dim, attention_dim

    key = jax.random.PRNGKey(0)
    k_enc, k_dec, k_par = jax.random.split(key, 3)

    encoder_out = jax.random.normal(k_enc, (B, P, E), jnp.float32)
    decoder_hidden = jax.random.normal(k_dec, (B, 1, D), jnp.float32)
    params = init_params(k_par, E, D, A)

    ref = attention_reference(encoder_out, decoder_hidden, params)

    # f32 path: exact semantics (exact reciprocal), tight tolerance.
    out_f32 = jax.block_until_ready(
        attention_forward(encoder_out, decoder_hidden, params, use_bf16=False))
    assert out_f32.shape == (B, E)
    assert jnp.allclose(out_f32, ref, atol=1e-4, rtol=1e-4), "f32 mismatch vs reference"

    # bf16-MXU path: only the MXU operands are bf16; weighted sum stays f32.
    out_bf16 = jax.block_until_ready(
        attention_forward(encoder_out, decoder_hidden, params, use_bf16=True))
    assert out_bf16.shape == (B, E)
    assert jnp.allclose(out_bf16, ref, atol=2e-2, rtol=2e-2), "bf16 mismatch vs reference"

    print("KERNEL_OK")
</pallas_src>

<mosaic_0001>
module attributes {stable_mosaic.version = 11 : i64} {
  func.func @attention_kernel(%arg0: i32, %arg1: memref<16x16x128xf32, #tpu.memory_space<vmem>>, %arg2: memref<16x1x128xf32, #tpu.memory_space<vmem>>, %arg3: memref<128x128xf32, #tpu.memory_space<vmem>>, %arg4: memref<1x128xf32, #tpu.memory_space<vmem>>, %arg5: memref<16x128xf32, #tpu.memory_space<vmem>>) attributes {dimension_semantics = [#tpu.dimension_semantics<parallel>], iteration_bounds = array<i64: 1>, scalar_prefetch = 0 : i64, scratch_operands = 0 : i64, tpu.core_type = #tpu.core_type<tc>, window_params = [{transform_indices = @transform_0, window_bounds = array<i64: 16, 16, 128>}, {transform_indices = @transform_1, window_bounds = array<i64: 16, 1, 128>}, {pipeline_mode = #tpu.pipeline_mode<synchronous>, transform_indices = @transform_2, window_bounds = array<i64: 128, 128>}, {pipeline_mode = #tpu.pipeline_mode<synchronous>, transform_indices = @transform_3, window_bounds = array<i64: 1, 128>}, {transform_indices = @transform_4, window_bounds = array<i64: 16, 128>}]} {
    %c0 = arith.constant 0 : index
    %c0_0 = arith.constant 0 : index
    %c0_1 = arith.constant 0 : index
    %0 = vector.load %arg1[%c0, %c0_0, %c0_1] : memref<16x16x128xf32, #tpu.memory_space<vmem>>, vector<16x16x128xf32>
    %1 = vector.shape_cast %0 : vector<16x16x128xf32> to vector<256x128xf32>
    %c0_2 = arith.constant 0 : index
    %c0_3 = arith.constant 0 : index
    %2 = vector.load %arg3[%c0_2, %c0_3] : memref<128x128xf32, #tpu.memory_space<vmem>>, vector<128x128xf32>
    %cst = arith.constant dense<0.000000e+00> : vector<256x128xf32>
    %3 = tpu.matmul %1, %2, %cst {dimension_numbers = #tpu.dot_dimension_numbers<[1], [0], [0], [1], [0, 0, 1, 1], [], []>} : vector<256x128xf32>, vector<128x128xf32>, vector<256x128xf32> -> vector<256x128xf32>
    %4 = vector.shape_cast %3 : vector<256x128xf32> to vector<16x16x128xf32>
    %c0_4 = arith.constant 0 : index
    %c0_5 = arith.constant 0 : index
    %c0_6 = arith.constant 0 : index
    %5 = vector.load %arg2[%c0_4, %c0_5, %c0_6] : memref<16x1x128xf32, #tpu.memory_space<vmem>>, vector<16x1x128xf32>
    %6 = vector.broadcast %5 : vector<16x1x128xf32> to vector<16x16x128xf32>
    %7 = arith.addf %4, %6 : vector<16x16x128xf32>
    %cst_7 = arith.constant 0.000000e+00 : f32
    %8 = vector.broadcast %cst_7 : f32 to vector<16x16x128xf32>
    %9 = arith.maximumf %7, %8 : vector<16x16x128xf32>
    %c0_8 = arith.constant 0 : index
    %c0_9 = arith.constant 0 : index
    %10 = vector.load %arg4[%c0_8, %c0_9] : memref<1x128xf32, #tpu.memory_space<vmem>>, vector<1x128xf32>
    %11 = vector.shape_cast %10 : vector<1x128xf32> to vector<1x1x128xf32>
    %12 = vector.broadcast %11 : vector<1x1x128xf32> to vector<16x16x128xf32>
    %13 = arith.mulf %9, %12 : vector<16x16x128xf32>
    %cst_10 = arith.constant dense<0.000000e+00> : vector<16x16xf32>
    %14 = vector.multi_reduction <add>, %13, %cst_10 [2] : vector<16x16x128xf32> to vector<16x16xf32>
    %15 = vector.shape_cast %14 : vector<16x16xf32> to vector<16x16x1xf32>
    %cst_11 = arith.constant dense<0xFF800000> : vector<16x1xf32>
    %16 = vector.multi_reduction <maximumf>, %15, %cst_11 [1] : vector<16x16x1xf32> to vector<16x1xf32>
    %17 = vector.shape_cast %16 : vector<16x1xf32> to vector<16x1x1xf32>
    %18 = vector.broadcast %17 : vector<16x1x1xf32> to vector<16x16x1xf32>
    %19 = arith.subf %15, %18 : vector<16x16x1xf32>
    %20 = math.exp %19 : vector<16x16x1xf32>
    %21 = vector.broadcast %20 : vector<16x16x1xf32> to vector<16x16x128xf32>
    %22 = arith.mulf %21, %0 : vector<16x16x128xf32>
    %cst_12 = arith.constant dense<0.000000e+00> : vector<16x128xf32>
    %23 = vector.multi_reduction <add>, %22, %cst_12 [1] : vector<16x16x128xf32> to vector<16x128xf32>
    %cst_13 = arith.constant dense<0.000000e+00> : vector<16x1xf32>
    %24 = vector.multi_reduction <add>, %20, %cst_13 [1] : vector<16x16x1xf32> to vector<16x1xf32>
    %25 = tpu.reciprocal %24 : vector<16x1xf32> -> vector<16x1xf32>
    %26 = vector.broadcast %25 : vector<16x1xf32> to vector<16x128xf32>
    %27 = arith.mulf %23, %26 : vector<16x128xf32>
    %c0_14 = arith.constant 0 : index
    %c0_15 = arith.constant 0 : index
    %28 = vector.load %arg5[%c0_14, %c0_15] : memref<16x128xf32, #tpu.memory_space<vmem>>, vector<16x128xf32>
    tpu.vector_store %arg5[%c0_14, %c0_15], %27 {strides = array<i32>} : memref<16x128xf32, #tpu.memory_space<vmem>>, vector<16x128xf32>,
    return
  }
  func.func @transform_0(%arg0: i32) -> (i32, i32, i32) {
    %c0_i32 = arith.constant 0 : i32
    %c0_i32_0 = arith.constant 0 : i32
    %c0_i32_1 = arith.constant 0 : i32
    return %arg0, %c0_i32, %c0_i32_0 : i32, i32, i32
  }
  func.func @transform_1(%arg0: i32) -> (i32, i32, i32) {
    %c0_i32 = arith.constant 0 : i32
    %c0_i32_0 = arith.constant 0 : i32
    %c0_i32_1 = arith.constant 0 : i32
    return %arg0, %c0_i32, %c0_i32_0 : i32, i32, i32
  }
  func.func @transform_2(%arg0: i32) -> (i32, i32) {
    %c0_i32 = arith.constant 0 : i32
    %c0_i32_0 = arith.constant 0 : i32
    %c0_i32_1 = arith.constant 0 : i32
    return %c0_i32, %c0_i32_0 : i32, i32
  }
  func.func @transform_3(%arg0: i32) -> (i32, i32) {
    %c0_i32 = arith.constant 0 : i32
    %c0_i32_0 = arith.constant 0 : i32
    %c0_i32_1 = arith.constant 0 : i32
    return %c0_i32, %c0_i32_0 : i32, i32
  }
  func.func @transform_4(%arg0: i32) -> (i32, i32) {
    %c0_i32 = arith.constant 0 : i32
    %c0_i32_0 = arith.constant 0 : i32
    return %arg0, %c0_i32 : i32, i32
  }
}

</mosaic_0001>

<bundles_post_ra>
// kernel: tpu_custom_call.1
= control target key start
LH: loop header
LB: loop body
LE: loop exit
PB: predicated region body
PF: predicated region fallthrough
CT: control target
= control target key end

     0   :  { %9 = vsyncpa [#allocation3], 0  ;;  %s1946_s0 = inlined_call_operand.hbm [shape: f32[16,16,128], index: 0, kind: input, shape index: {}]   ;;  %s1947_s1 = inlined_call_operand.hbm [shape: f32[16,1,128], index: 1, kind: input, shape index: {}]   ;;  %s1948_s2 = inlined_call_operand.hbm [shape: f32[128,128], index: 2, kind: input, shape index: {}]   ;;  %s1949_s3 = inlined_call_operand.vmem [shape: f32[1,128], index: 3, kind: input, shape index: {}]   ;;  %s1950_s4 = inlined_call_operand.hbm [shape: f32[16,128], index: 4, kind: output, shape index: {}]  }
   0x1   :  { %10 = vsyncpa [#allocation6], 0 }
   0x2   :  { %11 = vsyncpa [#allocation4], 0  ;;  %s1552_s15 = smov [#allocation5]  }
   0x3   :  { %s29_s16 = sshll.u32 %s1552_s15, 4  ;;  %s30_s16 = int_to_ptr.vmem [resolvable:$true] %s29_s16 }
   0x4   :  { %s1474_s17 = scalar_lea.vmem %s30_s16, 256  ;;  %p1479_p1 = scmp.lt.s32.totalorder %s30_s16, %s30_s16 }
   0x5   :  { %p1475_p0 = scmp.ne.s32.totalorder %s30_s16, %s1474_s17  ;;  %p1480_p2 = scmp.lt.s32.totalorder %s1474_s17, %s1474_s17 }
   0x7   :  { %p1481_p3 = por %p1480_p2, %p1479_p1 }
   0x9   :  { %p1482_p4 = pnand %p1481_p3, %p1475_p0 }
   0xb   :  { %1485 = shalt.err (!%p1482_p4)
}
   0xc   :  { %s1553_s18 = smov 16   ;;  %s1554_s19 = smov 1  }
   0xd   :  { %35 = dma.hbm_to_vmem [thread:$0]  %s1947_s1, 256, %s30_s16, [#allocation6], %s1553_s18, %s1553_s18, %s1554_s19  }
   0xe   :  { %s1555_s22 = smov [#allocation2]  }
   0xf   :  { %s17_s23 = sshll.u32 %s1555_s22, 4  ;;  %s18_s23 = int_to_ptr.vmem [resolvable:$true] %s17_s23 }
  0x10   :  { %s1494_s24 = scalar_lea.vmem %s18_s23, 4096  ;;  %p1499_p6 = scmp.lt.s32.totalorder %s18_s23, %s18_s23 }
  0x11   :  { %p1495_p5 = scmp.ne.s32.totalorder %s18_s23, %s1494_s24  ;;  %p1500_p7 = scmp.lt.s32.totalorder %s1494_s24, %s1494_s24 }
  0x13   :  { %p1501_p8 = por %p1500_p7, %p1499_p6 }
  0x15   :  { %p1502_p9 = pnand %p1501_p8, %p1495_p5 }
  0x17   :  { %1505 = shalt.err (!%p1502_p9)
}
  0x18   :  { %s1556_s25 = smov 128   ;;  %s1557_s26 = smov 8  }
  0x19   :  { %23 = dma.hbm_to_vmem [thread:$0]  %s1946_s0, 4096, %s18_s23, [#allocation3], %s1556_s25, %s1556_s25, %s1557_s26  }
  0x1a   :  { %s1558_s1 = smov [#allocation7]  }
  0x1b   :  { %s41_s29 = sshll.u32 %s1558_s1, 4  ;;  %s42_s29 = int_to_ptr.vmem [resolvable:$true] %s41_s29 }
  0x1c   :  { %s1514_s30 = scalar_lea.vmem %s42_s29, 2048  ;;  %p1519_p11 = scmp.lt.s32.totalorder %s42_s29, %s42_s29 }
  0x1d   :  { %p1515_p10 = scmp.ne.s32.totalorder %s42_s29, %s1514_s30  ;;  %p1520_p12 = scmp.lt.s32.totalorder %s1514_s30, %s1514_s30 }
  0x1f   :  { %p1521_p13 = por %p1520_p12, %p1519_p11 }
  0x21   :  { %p1522_p0 = pnand %p1521_p13, %p1515_p10 }
  0x23   :  { %1525 = shalt.err (!%p1522_p0)
}
  0x24   :  { %47 = dma.hbm_to_vmem [thread:$0]  %s1948_s2, 2048, %s42_s29, [#allocation6], %s1556_s25, %s1556_s25, %s1557_s26  }
  0x25   :  { %1546 = dma.done.wait [#allocation3], 4096  }
  0x26   :  { %1547 = vsyncadd [#allocation3], 4294963200 }
  0x27   :  { %1548 = dma.done.wait [#allocation6], 2304  }
  0x28   :  { %1549 = vsyncadd [#allocation6], 4294964992  ;;  %v106_v0 = vld [vmem:[#allocation7 + $0x78] sm:$0xff]  ;;  %v105_v1 = vld [vmem:[#allocation7 + $0x70] sm:$0xff]  ;;  %vm1123_vm0 = vcmask 1041409   ;;  %vm1125_vm1 = vcmask 1042434  }
  0x29   :  { %1231 = vmatprep.subr.mxu0 %v106_v0  ;;  %1311 = vmatprep.subr.mxu1 %v106_v0  ;;  %v104_v2 = vld [vmem:[#allocation7 + $0x68] sm:$0xff]  ;;  %v103_v3 = vld [vmem:[#allocation7 + $0x60] sm:$0xff]  ;;  %v102_v4 = vld [vmem:[#allocation7 + $0x58] sm:$0xff]  ;;  %vm1127_vm2 = vcmask 1043459   ;;  %vm1129_vm3 = vcmask 1044484   ;;  %vm1131_vm4 = vcmask 1045509  }
  0x2a   :  { %1232 = vmatpush3.msra.mxu0 %v106_v0  ;;  %1327 = vmatpush3.msra.mxu1 %v106_v0  ;;  %v101_v5 = vld [vmem:[#allocation7 + $0x50] sm:$0xff]  ;;  %v100_v6 = vld [vmem:[#allocation7 + $0x48] sm:$0xff]  ;;  %v99_v7 = vld [vmem:[#allocation7 + $0x40] sm:$0xff]  ;;  %vm1133_vm5 = vcmask 1046534   ;;  %vm1135_vm6 = vcmask 1047559  }
  0x2b   :  { %1233 = vmatprep.subr.mxu0 %v105_v1  ;;  %1312 = vmatprep.subr.mxu1 %v105_v1  ;;  %v98_v8 = vld [vmem:[#allocation7 + $0x38] sm:$0xff]  ;;  %v97_v9 = vld [vmem:[#allocation7 + $0x30] sm:$0xff]  ;;  %v96_v10 = vld [vmem:[#allocation7 + $0x28] sm:$0xff] }
  0x2c   :  { %1234 = vmatpush3.msra.mxu0 %v105_v1  ;;  %1328 = vmatpush3.msra.mxu1 %v105_v1  ;;  %v95_v11 = vld [vmem:[#allocation7 + $0x20] sm:$0xff]  ;;  %v94_v12 = vld [vmem:[#allocation7 + $0x18] sm:$0xff]  ;;  %v93_v13 = vld [vmem:[#allocation7 + $0x10] sm:$0xff] }
  0x2d   :  { %1235 = vmatprep.subr.mxu0 %v104_v2  ;;  %1313 = vmatprep.subr.mxu1 %v104_v2  ;;  %v92_v14 = vld [vmem:[#allocation7 + $0x8] sm:$0xff]  ;;  %v91_v15 = vld [vmem:[#allocation7] sm:$0xff]  ;;  %v1600_v16 = vld [vmem:[#allocation2] sm:$0xff] }
  0x2e   :  { %1236 = vmatpush3.msra.mxu0 %v104_v2  ;;  %1329 = vmatpush3.msra.mxu1 %v104_v2  ;;  %v1602_v17 = vld [vmem:[#allocation2 + $0x80] sm:$0xff]  ;;  %v1604_v18 = vld [vmem:[#allocation2 + $0x8] sm:$0xff]  ;;  %v1608_v20 = vld [vmem:[#allocation2 + $0x10] sm:$0xff] }
  0x2f   :  { %1237 = vmatprep.subr.mxu0 %v103_v3  ;;  %1314 = vmatprep.subr.mxu1 %v103_v3  ;;  %v1606_v19 = vld [vmem:[#allocation2 + $0x88] sm:$0xff]  ;;  %v1610_v21 = vld [vmem:[#allocation2 + $0x90] sm:$0xff]  ;;  %v1617_v22 = vld [vmem:[#allocation2 + $0x18] sm:$0xff] }
  0x30   :  { %1238 = vmatpush3.msra.mxu0 %v103_v3  ;;  %1330 = vmatpush3.msra.mxu1 %v103_v3  ;;  %v1620_v23 = vld [vmem:[#allocation2 + $0x98] sm:$0xff]  ;;  %v1622_v24 = vld [vmem:[#allocation2 + $0x20] sm:$0xff]  ;;  %v1629_v26 = vld [vmem:[#allocation2 + $0x28] sm:$0xff] }
  0x31   :  { %1239 = vmatprep.subr.mxu0 %v102_v4  ;;  %1315 = vmatprep.subr.mxu1 %v102_v4  ;;  %v1624_v25 = vld [vmem:[#allocation2 + $0xa0] sm:$0xff]  ;;  %v1632_v27 = vld [vmem:[#allocation2 + $0xa8] sm:$0xff]  ;;  %v1634_v28 = vld [vmem:[#allocation2 + $0x30] sm:$0xff] }
  0x32   :  { %1240 = vmatpush3.msra.mxu0 %v102_v4  ;;  %1331 = vmatpush3.msra.mxu1 %v102_v4  ;;  %v81_v29 = vld [vmem:[#allocation2 + $0xb0] sm:$0xff]  ;;  %v66_v30 = vld [vmem:[#allocation2 + $0x38] sm:$0xff]  ;;  %v67_v32 = vld [vmem:[#allocation2 + $0x40] sm:$0xff] }
  0x33   :  { %1241 = vmatprep.subr.mxu0 %v101_v5  ;;  %1316 = vmatprep.subr.mxu1 %v101_v5  ;;  %v82_v31 = vld [vmem:[#allocation2 + $0xb8] sm:$0xff]  ;;  %v83_v33 = vld [vmem:[#allocation2 + $0xc0] sm:$0xff]  ;;  %v68_v34 = vld [vmem:[#allocation2 + $0x48] sm:$0xff] }
  0x34   :  { %1242 = vmatpush3.msra.mxu0 %v101_v5  ;;  %1332 = vmatpush3.msra.mxu1 %v101_v5  ;;  %v84_v35 = vld [vmem:[#allocation2 + $0xc8] sm:$0xff]  ;;  %v69_v36 = vld [vmem:[#allocation2 + $0x50] sm:$0xff]  ;;  %v70_v38 = vld [vmem:[#allocation2 + $0x58] sm:$0xff] }
  0x35   :  { %1243 = vmatprep.subr.mxu0 %v100_v6  ;;  %1317 = vmatprep.subr.mxu1 %v100_v6  ;;  %v85_v37 = vld [vmem:[#allocation2 + $0xd0] sm:$0xff]  ;;  %v86_v39 = vld [vmem:[#allocation2 + $0xd8] sm:$0xff]  ;;  %v71_v40 = vld [vmem:[#allocation2 + $0x60] sm:$0xff] }
  0x36   :  { %1244 = vmatpush3.msra.mxu0 %v100_v6  ;;  %1333 = vmatpush3.msra.mxu1 %v100_v6  ;;  %v87_v41 = vld [vmem:[#allocation2 + $0xe0] sm:$0xff]  ;;  %v72_v42 = vld [vmem:[#allocation2 + $0x68] sm:$0xff]  ;;  %v73_v44 = vld [vmem:[#allocation2 + $0x70] sm:$0xff] }
  0x37   :  { %1245 = vmatprep.subr.mxu0 %v99_v7  ;;  %1318 = vmatprep.subr.mxu1 %v99_v7  ;;  %v88_v43 = vld [vmem:[#allocation2 + $0xe8] sm:$0xff]  ;;  %v89_v45 = vld [vmem:[#allocation2 + $0xf0] sm:$0xff]  ;;  %v74_v46 = vld [vmem:[#allocation2 + $0x78] sm:$0xff] }
  0x38   :  { %1246 = vmatpush3.msra.mxu0 %v99_v7  ;;  %1334 = vmatpush3.msra.mxu1 %v99_v7  ;;  %v90_v47 = vld [vmem:[#allocation2 + $0xf8] sm:$0xff]  ;;  %v1166_v48 = vld [vmem:[#allocation5] ss:$0 sm:$0xff]  ;;  %v1174_v49 = vld [vmem:[#allocation5 + $0x8] ss:$0 sm:$0xff] }
  0x39   :  { %1247 = vmatprep.subr.mxu0 %v98_v8  ;;  %1319 = vmatprep.subr.mxu1 %v98_v8  ;;  %v1167_v56 = vld [vmem:[#allocation5 + $0x1] ss:$0 sm:$0xff]  ;;  %v1175_v57 = vld [vmem:[#allocation5 + $0x9] ss:$0 sm:$0xff]  ;;  %v1642_v61 = vld [vmem:[%s1949_s3] ss:$0 sm:$0xff] }
  0x3a   :  { %1248 = vmatpush3.msra.mxu0 %v98_v8  ;;  %1335 = vmatpush3.msra.mxu1 %v98_v8  ;;  %s1559_s3 = smov [#allocation8]  }
  0x3b   :  { %1249 = vmatprep.subr.mxu0 %v97_v9  ;;  %1320 = vmatprep.subr.mxu1 %v97_v9  ;;  %s1153_s7 = sshll.u32 %s1559_s3, 4  ;;  %s1154_s7 = int_to_ptr.vmem [resolvable:$true] %s1153_s7 }
  0x3c   :  { %1250 = vmatpush3.msra.mxu0 %v97_v9  ;;  %1336 = vmatpush3.msra.mxu1 %v97_v9  ;;  %s1526_s8 = scalar_lea.vmem %s1154_s7, 256  ;;  %p1531_p2 = scmp.lt.s32.totalorder %s1154_s7, %s1154_s7 }
  0x3d   :  { %1251 = vmatprep.subr.mxu0 %v96_v10  ;;  %1321 = vmatprep.subr.mxu1 %v96_v10  ;;  %p1527_p1 = scmp.ne.s32.totalorder %s1154_s7, %s1526_s8  ;;  %p1532_p3 = scmp.lt.s32.totalorder %s1526_s8, %s1526_s8 }
  0x3e   :  { %1252 = vmatpush3.msra.mxu0 %v96_v10  ;;  %1337 = vmatpush3.msra.mxu1 %v96_v10 }
  0x3f   :  { %1253 = vmatprep.subr.mxu0 %v95_v11  ;;  %1322 = vmatprep.subr.mxu1 %v95_v11  ;;  %p1533_p4 = por %p1532_p3, %p1531_p2 }
  0x40   :  { %1254 = vmatpush3.msra.mxu0 %v95_v11  ;;  %1338 = vmatpush3.msra.mxu1 %v95_v11 }
  0x41   :  { %1255 = vmatprep.subr.mxu0 %v94_v12  ;;  %1323 = vmatprep.subr.mxu1 %v94_v12  ;;  %p1534_p5 = pnand %p1533_p4, %p1527_p1 }
  0x42   :  { %1256 = vmatpush3.msra.mxu0 %v94_v12  ;;  %1339 = vmatpush3.msra.mxu1 %v94_v12 }
  0x43   :  { %1257 = vmatprep.subr.mxu0 %v93_v13  ;;  %1324 = vmatprep.subr.mxu1 %v93_v13 }
  0x44   :  { %1258 = vmatpush3.msra.mxu0 %v93_v13  ;;  %1340 = vmatpush3.msra.mxu1 %v93_v13 }
  0x45   :  { %1259 = vmatprep.subr.mxu0 %v92_v14  ;;  %1325 = vmatprep.subr.mxu1 %v92_v14 }
  0x46   :  { %1260 = vmatpush3.msra.mxu0 %v92_v14  ;;  %1341 = vmatpush3.msra.mxu1 %v92_v14 }
  0x47   :  { %1261 = vmatprep.subr.mxu0 %v91_v15  ;;  %1326 = vmatprep.subr.mxu1 %v91_v15 }
  0x48   :  { %1262 = vmatpush3.msra.mxu0 %v91_v15  ;;  %1342 = vmatpush3.msra.mxu1 %v91_v15 }
  0x49   :  { %1263 = vmatprep.mubr.f32.mxu0 %v1600_v16  ;;  %1287 = vmatprep.mubr.f32.mxu1 %v1602_v17 }
  0x4a   :  { %1264 = vmatmul.mubr.f32.vlgmr.msra.gmra.mxu0 %v1604_v18  ;;  %1288 = vmatmul.mubr.f32.vlgmr.msra.gmra.mxu1 %v1606_v19 }
  0x4b   :  { %1266 = vmatprep.mubr.f32.mxu0 %v1608_v20  ;;  %1290 = vmatprep.mubr.f32.mxu1 %v1610_v21 }
  0x4e   :  { %1267 = vmatmul.mubr.f32.gmra.mxu0 %v1617_v22  ;;  %1291 = vmatmul.mubr.f32.gmra.mxu1 %v1620_v23 }
  0x4f   :  { %1269 = vmatprep.mubr.f32.mxu0 %v1622_v24  ;;  %1293 = vmatprep.mubr.f32.mxu1 %v1624_v25 }
  0x52   :  { %1270 = vmatmul.mubr.f32.gmra.mxu0 %v1629_v26  ;;  %1294 = vmatmul.mubr.f32.gmra.mxu1 %v1632_v27 }
  0x53   :  { %1272 = vmatprep.mubr.f32.mxu0 %v1634_v28  ;;  %1296 = vmatprep.mubr.f32.mxu1 %v81_v29 }
  0x56   :  { %1273 = vmatmul.mubr.f32.gmra.mxu0 %v66_v30  ;;  %1297 = vmatmul.mubr.f32.gmra.mxu1 %v82_v31  ;;  %v1168_v30 = vld [vmem:[#allocation5 + $0x2] ss:$0 sm:$0xff] }
  0x57   :  { %1275 = vmatprep.mubr.f32.mxu0 %v67_v32  ;;  %1299 = vmatprep.mubr.f32.mxu1 %v83_v33 }
  0x5a   :  { %1276 = vmatmul.mubr.f32.gmra.mxu0 %v68_v34  ;;  %1300 = vmatmul.mubr.f32.gmra.mxu1 %v84_v35 }
  0x5b   :  { %1278 = vmatprep.mubr.f32.mxu0 %v69_v36  ;;  %1302 = vmatprep.mubr.f32.mxu1 %v85_v37 }
  0x5e   :  { %1279 = vmatmul.mubr.f32.gmra.mxu0 %v70_v38  ;;  %1303 = vmatmul.mubr.f32.gmra.mxu1 %v86_v39  ;;  %v1176_v38 = vld [vmem:[#allocation5 + $0xa] ss:$0 sm:$0xff] }
  0x5f   :  { %1281 = vmatprep.mubr.f32.mxu0 %v71_v40  ;;  %1305 = vmatprep.mubr.f32.mxu1 %v87_v41 }
  0x62   :  { %1282 = vmatmul.mubr.f32.gmra.mxu0 %v72_v42  ;;  %1306 = vmatmul.mubr.f32.gmra.mxu1 %v88_v43 }
  0x63   :  { %1284 = vmatprep.mubr.f32.mxu0 %v73_v44  ;;  %1308 = vmatprep.mubr.f32.mxu1 %v89_v45 }
  0x66   :  { %1285 = vmatmul.mubr.f32.gmra.mxu0 %v74_v46  ;;  %1309 = vmatmul.mubr.f32.gmra.mxu1 %v90_v47 }
 0x10a   :  { %v1265_v50 = vpop.f32.mrf.mxu0  ;;  %v1289_v51 = vpop.f32.mrf.mxu1 }
 0x10b   :  { %v445_v52 = vadd.f32 %v1265_v50, %v1166_v48  ;;  %v461_v53 = vadd.f32 %v1289_v51, %v1174_v49 }
 0x10c   :  { %v173_v54 = vpop.f32.mrf.mxu0  ;;  %v253_v55 = vpop.f32.mrf.mxu1 }
 0x10d   :  { %v477_v58 = vmax.f32 %v445_v52, 0.0  ;;  %v493_v59 = vmax.f32 %v461_v53, 0.0  ;;  %v444_v60 = vadd.f32 %v1166_v48, %v173_v54  ;;  %v460_v0 = vadd.f32 %v1174_v49, %v253_v55  ;;  %v1169_v48 = vld [vmem:[#allocation5 + $0x3] ss:$0 sm:$0xff] }
 0x10e   :  { %v1268_v62 = vpop.f32.mrf.mxu0  ;;  %v1292_v63 = vpop.f32.mrf.mxu1 }
 0x10f   :  { %v447_v1 = vadd.f32 %v1268_v62, %v1167_v56  ;;  %v463_v2 = vadd.f32 %v1292_v63, %v1175_v57  ;;  %v476_v3 = vmax.f32 %v444_v60, 0.0  ;;  %v532_v5 = vmul.f32 %v1642_v61, %v493_v59 }
 0x110   :  { %v183_v4 = vpop.f32.mrf.mxu0  ;;  %v516_v6 = vmul.f32 %v1642_v61, %v477_v58  ;;  %v263_v8 = vpop.f32.mrf.mxu1  ;;  %v492_v11 = vmax.f32 %v460_v0, 0.0 }
 0x111   :  { %v479_v7 = vmax.f32 %v447_v1, 0.0  ;;  %v495_v9 = vmax.f32 %v463_v2, 0.0  ;;  %581 = vadd.xlane.f32.xlu1 %v532_v5  ;;  %v446_v13 = vadd.f32 %v1167_v56, %v183_v4  ;;  %v462_v14 = vadd.f32 %v1175_v57, %v263_v8  ;;  %v1177_v56 = vld [vmem:[#allocation5 + $0xb] ss:$0 sm:$0xff] }
 0x112   :  { %549 = vadd.xlane.f32.xlu0 %v516_v6  ;;  %v1271_v10 = vpop.f32.mrf.mxu0  ;;  %v515_v15 = vmul.f32 %v1642_v61, %v476_v3  ;;  %v1295_v29 = vpop.f32.mrf.mxu1  ;;  %v531_v33 = vmul.f32 %v1642_v61, %v492_v11  ;;  %v1170_v3 = vld [vmem:[#allocation5 + $0x4] ss:$0 sm:$0xff]  ;;  %v1178_v11 = vld [vmem:[#allocation5 + $0xc] ss:$0 sm:$0xff] }
 0x113   :  { %v518_v12 = vmul.f32 %v1642_v61, %v479_v7  ;;  %v534_v32 = vmul.f32 %v1642_v61, %v495_v9  ;;  %v478_v34 = vmax.f32 %v446_v13, 0.0  ;;  %v494_v35 = vmax.f32 %v462_v14, 0.0 }
 0x114   :  { %v193_v31 = vpop.f32.mrf.mxu0  ;;  %v449_v36 = vadd.f32 %v1271_v10, %v1168_v30  ;;  %v273_v39 = vpop.f32.mrf.mxu1  ;;  %v465_v41 = vadd.f32 %v1295_v29, %v1176_v38 }
 0x115   :  { %553 = vadd.xlane.f32.xlu1 %v518_v12  ;;  %v448_v37 = vadd.f32 %v1168_v30, %v193_v31  ;;  %v464_v42 = vadd.f32 %v1176_v38, %v273_v39  ;;  %v533_v45 = vmul.f32 %v1642_v61, %v494_v35  ;;  %v517_v46 = vmul.f32 %v1642_v61, %v478_v34  ;;  %v1171_v34 = vld [vmem:[#allocation5 + $0x5] ss:$0 sm:$0xff] }
 0x116   :  { %547 = vadd.xlane.f32.xlu0 %v515_v15  ;;  %v1274_v40 = vpop.f32.mrf.mxu0  ;;  %v481_v43 = vmax.f32 %v449_v36, 0.0  ;;  %v1298_v47 = vpop.f32.mrf.mxu1  ;;  %v497_v50 = vmax.f32 %v465_v41, 0.0 }
 0x117   :  { %v480_v44 = vmax.f32 %v448_v37, 0.0  ;;  %v496_v51 = vmax.f32 %v464_v42, 0.0  ;;  %v451_v52 = vadd.f32 %v1274_v40, %v1169_v48  ;;  %v467_v59 = vadd.f32 %v1298_v47, %v1177_v56  ;;  %v1179_v42 = vld [vmem:[#allocation5 + $0xd] ss:$0 sm:$0xff] }
 0x118   :  { %v203_v49 = vpop.f32.mrf.mxu0  ;;  %v520_v54 = vmul.f32 %v1642_v61, %v481_v43  ;;  %v283_v57 = vpop.f32.mrf.mxu1  ;;  %v536_v0 = vmul.f32 %v1642_v61, %v497_v50 }
 0x119   :  { %585 = vadd.xlane.f32.xlu1 %v534_v32  ;;  %v450_v53 = vadd.f32 %v1169_v48, %v203_v49  ;;  %v519_v55 = vmul.f32 %v1642_v61, %v480_v44  ;;  %v466_v60 = vadd.f32 %v1177_v56, %v283_v57  ;;  %v483_v62 = vmax.f32 %v451_v52, 0.0  ;;  %v1172_v52 = vld [vmem:[#allocation5 + $0x6] ss:$0 sm:$0xff] }
 0x11a   :  { %579 = vadd.xlane.f32.xlu0 %v531_v33  ;;  %v1277_v58 = vpop.f32.mrf.mxu0  ;;  %v535_v1 = vmul.f32 %v1642_v61, %v496_v51  ;;  %v1301_v2 = vpop.f32.mrf.mxu1  ;;  %v499_v5 = vmax.f32 %v467_v59, 0.0 }
 0x11b   :  { %v482_v63 = vmax.f32 %v450_v53, 0.0  ;;  %v498_v6 = vmax.f32 %v466_v60, 0.0  ;;  %v453_v7 = vadd.f32 %v1277_v58, %v1170_v3  ;;  %v522_v9 = vmul.f32 %v1642_v61, %v483_v62  ;;  %v1180_v60 = vld [vmem:[#allocation5 + $0xe] ss:$0 sm:$0xff] }
 0x11c   :  { %v213_v4 = vpop.f32.mrf.mxu0  ;;  %v293_v12 = vpop.f32.mrf.mxu1  ;;  %v469_v14 = vadd.f32 %v1301_v2, %v1178_v11  ;;  %v538_v31 = vmul.f32 %v1642_v61, %v499_v5 }
 0x11d   :  { %551 = vadd.xlane.f32.xlu1 %v517_v46  ;;  %v452_v8 = vadd.f32 %v1170_v3, %v213_v4  ;;  %v521_v10 = vmul.f32 %v1642_v61, %v482_v63  ;;  %v468_v15 = vadd.f32 %v1178_v11, %v293_v12  ;;  %v485_v29 = vmax.f32 %v453_v7, 0.0 }
 0x11e   :  { %583 = vadd.xlane.f32.xlu0 %v533_v45  ;;  %v1280_v13 = vpop.f32.mrf.mxu0  ;;  %v537_v32 = vmul.f32 %v1642_v61, %v498_v6  ;;  %v1304_v33 = vpop.f32.mrf.mxu1  ;;  %v501_v36 = vmax.f32 %v469_v14, 0.0  ;;  %v1173_v6 = vld [vmem:[#allocation5 + $0x7] ss:$0 sm:$0xff] }
 0x11f   :  { %v484_v30 = vmax.f32 %v452_v8, 0.0  ;;  %v500_v37 = vmax.f32 %v468_v15, 0.0  ;;  %v455_v38 = vadd.f32 %v1280_v13, %v1171_v34  ;;  %v524_v40 = vmul.f32 %v1642_v61, %v485_v29  ;;  %v1181_v15 = vld [vmem:[#allocation5 + $0xf] ss:$0 sm:$0xff] }
 0x120   :  { %v223_v35 = vpop.f32.mrf.mxu0  ;;  %v303_v43 = vpop.f32.mrf.mxu1  ;;  %v471_v45 = vadd.f32 %v1304_v33, %v1179_v42  ;;  %v540_v49 = vmul.f32 %v1642_v61, %v501_v36 }
 0x121   :  { %557 = vadd.xlane.f32.xlu1 %v520_v54  ;;  %v454_v39 = vadd.f32 %v1171_v34, %v223_v35  ;;  %v523_v41 = vmul.f32 %v1642_v61, %v484_v30  ;;  %v470_v46 = vadd.f32 %v1179_v42, %v303_v43  ;;  %v487_v47 = vmax.f32 %v455_v38, 0.0 }
 0x122   :  { %555 = vadd.xlane.f32.xlu0 %v519_v55  ;;  %v1283_v44 = vpop.f32.mrf.mxu0  ;;  %v539_v50 = vmul.f32 %v1642_v61, %v500_v37  ;;  %v1307_v51 = vpop.f32.mrf.mxu1  ;;  %v503_v54 = vmax.f32 %v471_v45, 0.0 }
 0x123   :  { %v486_v48 = vmax.f32 %v454_v39, 0.0  ;;  %v502_v55 = vmax.f32 %v470_v46, 0.0  ;;  %v457_v56 = vadd.f32 %v1283_v44, %v1172_v52  ;;  %v526_v58 = vmul.f32 %v1642_v61, %v487_v47 }
 0x124   :  { %v233_v53 = vpop.f32.mrf.mxu0  ;;  %v313_v62 = vpop.f32.mrf.mxu1  ;;  %v542_v4 = vmul.f32 %v1642_v61, %v503_v54 }
 0x125   :  { %589 = vadd.xlane.f32.xlu1 %v536_v0  ;;  %v456_v57 = vadd.f32 %v1172_v52, %v233_v53  ;;  %v525_v59 = vmul.f32 %v1642_v61, %v486_v48  ;;  %v473_v0 = vadd.f32 %v1307_v51, %v1180_v60  ;;  %v489_v2 = vmax.f32 %v457_v56, 0.0 }
 0x126   :  { %587 = vadd.xlane.f32.xlu0 %v535_v1  ;;  %v1286_v63 = vpop.f32.mrf.mxu0  ;;  %v472_v1 = vadd.f32 %v1180_v60, %v313_v62  ;;  %v541_v5 = vmul.f32 %v1642_v61, %v502_v55  ;;  %v1310_v8 = vpop.f32.mrf.mxu1 }
 0x127   :  { %v488_v3 = vmax.f32 %v456_v57, 0.0  ;;  %v459_v11 = vadd.f32 %v1286_v63, %v1173_v6  ;;  %v528_v13 = vmul.f32 %v1642_v61, %v489_v2  ;;  %v475_v30 = vadd.f32 %v1310_v8, %v1181_v15 }
 0x128   :  { %v243_v7 = vpop.f32.mrf.mxu0  ;;  %v323_v29 = vpop.f32.mrf.mxu1 }
 0x129   :  { %561 = vadd.xlane.f32.xlu1 %v522_v9  ;;  %v505_v9 = vmax.f32 %v473_v0, 0.0  ;;  %v458_v12 = vadd.f32 %v1173_v6, %v243_v7  ;;  %v527_v14 = vmul.f32 %v1642_v61, %v488_v3  ;;  %v474_v34 = vadd.f32 %v1181_v15, %v323_v29 }
 0x12a   :  { %559 = vadd.xlane.f32.xlu0 %v521_v10  ;;  %v504_v10 = vmax.f32 %v472_v1, 0.0  ;;  %v507_v36 = vmax.f32 %v475_v30, 0.0 }
 0x12b   :  { %v490_v33 = vmax.f32 %v458_v12, 0.0  ;;  %v506_v37 = vmax.f32 %v474_v34, 0.0 }
 0x12c   :  { %v543_v35 = vmul.f32 %v1642_v61, %v504_v10 }
 0x12d   :  { %593 = vadd.xlane.f32.xlu1 %v538_v31  ;;  %v544_v31 = vmul.f32 %v1642_v61, %v505_v9  ;;  %v529_v39 = vmul.f32 %v1642_v61, %v490_v33 }
 0x12e   :  { %591 = vadd.xlane.f32.xlu0 %v537_v32  ;;  %v491_v32 = vmax.f32 %v459_v11, 0.0 }
 0x130   :  { %v530_v38 = vmul.f32 %v1642_v61, %v491_v32 }
 0x131   :  { %565 = vadd.xlane.f32.xlu1 %v524_v40  ;;  %v546_v40 = vmul.f32 %v1642_v61, %v507_v36 }
 0x132   :  { %563 = vadd.xlane.f32.xlu0 %v523_v41  ;;  %v545_v41 = vmul.f32 %v1642_v61, %v506_v37 }
 0x135   :  { %597 = vadd.xlane.f32.xlu1 %v540_v49 }
 0x136   :  { %595 = vadd.xlane.f32.xlu0 %v539_v50 }
 0x139   :  { %569 = vadd.xlane.f32.xlu1 %v526_v58 }
 0x13a   :  { %567 = vadd.xlane.f32.xlu0 %v525_v59 }
 0x13d   :  { %601 = vadd.xlane.f32.xlu1 %v542_v4 }
 0x13e   :  { %599 = vadd.xlane.f32.xlu0 %v541_v5 }
 0x141   :  { %573 = vadd.xlane.f32.xlu1 %v528_v13 }
 0x142   :  { %571 = vadd.xlane.f32.xlu0 %v527_v14 }
 0x145   :  { %605 = vadd.xlane.f32.xlu1 %v544_v31 }
 0x146   :  { %603 = vadd.xlane.f32.xlu0 %v543_v35 }
 0x149   :  { %577 = vadd.xlane.f32.xlu1 %v530_v38 }
 0x14a   :  { %575 = vadd.xlane.f32.xlu0 %v529_v39 }
 0x14d   :  { %609 = vadd.xlane.f32.xlu1 %v546_v40 }
 0x14e   :  { %607 = vadd.xlane.f32.xlu0 %v545_v41 }
 0x19a   :  { %v582_v42 = vpop.xlane.xlu1 %581 }
 0x19b   :  { %v550_v43 = vpop.xlane.xlu0 %549 }
 0x19e   :  { %v1676_v45 = vpop.xlane.xlu1 %553 }
 0x19f   :  { %v548_v44 = vpop.xlane.xlu0 %547 }
 0x1a0   :  { %v611_v46 = vmax.f32 %v548_v44, %v550_v43 }
 0x1a2   :  { %v612_v47 = vrot.slane %v611_v46, 4  ;;  %v1678_v49 = vpop.xlane.xlu1 %585 }
 0x1a3   :  { %v580_v48 = vpop.xlane.xlu0 %579 }
 0x1a4   :  { %v613_v50 = vmax.f32 %v611_v46, %v612_v47  ;;  %v667_v51 = vmax.f32 %v580_v48, %v582_v42 }
 0x1a6   :  { %v614_v52 = vrot.slane %v613_v50, 2  ;;  %v668_v53 = vrot.slane %v667_v51, 4  ;;  %v552_v55 = vpop.xlane.xlu1 %551 }
 0x1a7   :  { %v584_v54 = vpop.xlane.xlu0 %583  ;;  %v618_v58 = vmax.f32 %v552_v55, %v1676_v45 }
 0x1a8   :  { %v615_v56 = vmax.f32 %v613_v50, %v614_v52  ;;  %v669_v61 = vmax.f32 %v667_v51, %v668_v53  ;;  %v674_v57 = vmax.f32 %v584_v54, %v1678_v49 }
 0x1a9   :  { %v619_v63 = vrot.slane %v618_v58, 4 }
 0x1aa   :  { %v616_v59 = vrot.slane %v615_v56, 1  ;;  %v670_v60 = vrot.slane %v669_v61, 2  ;;  %v675_v62 = vrot.slane %v674_v57, 4  ;;  %v1682_v0 = vpop.xlane.xlu1 %557 }
 0x1ab   :  { %v1684_v1 = vpop.xlane.xlu0 %555  ;;  %v620_v5 = vmax.f32 %v618_v58, %v619_v63 }
 0x1ac   :  { %v617_v2 = vmax.f32 %v615_v56, %v616_v59  ;;  %v671_v3 = vmax.f32 %v669_v61, %v670_v60  ;;  %v676_v4 = vmax.f32 %v674_v57, %v675_v62  ;;  %v625_v6 = vmax.f32 %v1684_v1, %v1682_v0 }
 0x1ad   :  { %v621_v11 = vrot.slane %v620_v5, 2 }
 0x1ae   :  { %v723_v7 = vsub.f32 %v548_v44, %v617_v2  ;;  %v724_v8 = vsub.f32 %v550_v43, %v617_v2  ;;  %v672_v9 = vrot.slane %v671_v3, 1  ;;  %v677_v10 = vrot.slane %v676_v4, 2  ;;  %v1688_v13 = vpop.xlane.xlu1 %589 }
 0x1af   :  { %v626_v12 = vrot.slane %v625_v6, 4  ;;  %v1690_v14 = vpop.xlane.xlu0 %587  ;;  %v622_v32 = vmax.f32 %v620_v5, %v621_v11 }
 0x1b0   :  { %v755_v15 = vmul.f32 1.442695, %v723_v7  ;;  %v757_v29 = vmul.f32 1.442695, %v724_v8  ;;  %v673_v30 = vmax.f32 %v671_v3, %v672_v9  ;;  %v678_v31 = vmax.f32 %v676_v4, %v677_v10 }
 0x1b1   :  { %v627_v33 = vmax.f32 %v625_v6, %v626_v12  ;;  %v681_v34 = vmax.f32 %v1690_v14, %v1688_v13  ;;  %v623_v38 = vrot.slane %v622_v32, 1 }
 0x1b2   :  { %1351 = vpow2.f32 %v755_v15  ;;  %v739_v35 = vsub.f32 %v580_v48, %v673_v30  ;;  %v740_v36 = vsub.f32 %v582_v42, %v673_v30  ;;  %v679_v37 = vrot.slane %v678_v31, 1  ;;  %v1694_v41 = vpop.xlane.xlu1 %561 }
 0x1b3   :  { %1353 = vpow2.f32 %v757_v29  ;;  %v628_v39 = vrot.slane %v627_v33, 2  ;;  %v682_v40 = vrot.slane %v681_v34, 4  ;;  %v1696_v43 = vpop.xlane.xlu0 %559  ;;  %v624_v51 = vmax.f32 %v622_v32, %v623_v38 }
 0x1b4   :  { %v787_v44 = vmul.f32 1.442695, %v739_v35  ;;  %v789_v46 = vmul.f32 1.442695, %v740_v36  ;;  %v680_v47 = vmax.f32 %v678_v31, %v679_v37  ;;  %v632_v50 = vmax.f32 %v1696_v43, %v1694_v41 }
 0x1b5   :  { %v629_v52 = vmax.f32 %v627_v33, %v628_v39  ;;  %v683_v53 = vmax.f32 %v681_v34, %v682_v40  ;;  %v725_v61 = vsub.f32 %v552_v55, %v624_v51  ;;  %v726_v57 = vsub.f32 %v1676_v45, %v624_v51 }
 0x1b6   :  { %1355 = vpow2.f32 %v787_v44  ;;  %v741_v42 = vsub.f32 %v584_v54, %v680_v47  ;;  %v742_v48 = vsub.f32 %v1678_v49, %v680_v47  ;;  %v633_v56 = vrot.slane %v632_v50, 4  ;;  %v1702_v59 = vpop.xlane.xlu1 %593 }
 0x1b7   :  { %1357 = vpow2.f32 %v789_v46  ;;  %v630_v58 = vrot.slane %v629_v52, 1  ;;  %v1704_v60 = vpop.xlane.xlu0 %591  ;;  %v684_v2 = vrot.slane %v683_v53, 2  ;;  %v759_v4 = vmul.f32 1.442695, %v725_v61 }
 0x1b8   :  { %v791_v62 = vmul.f32 1.442695, %v741_v42  ;;  %v793_v63 = vmul.f32 1.442695, %v742_v48  ;;  %v634_v3 = vmax.f32 %v632_v50, %v633_v56  ;;  %v761_v5 = vmul.f32 1.442695, %v726_v57 }
 0x1b9   :  { %v631_v6 = vmax.f32 %v629_v52, %v630_v58  ;;  %v688_v49 = vmax.f32 %v1704_v60, %v1702_v59  ;;  %v685_v54 = vmax.f32 %v683_v53, %v684_v2 }
 0x1ba   :  { %1359 = vpow2.f32 %v791_v62  ;;  %v635_v55 = vrot.slane %v634_v3, 2  ;;  %v1710_v33 = vpop.xlane.xlu1 %565 }
 0x1bb   :  { %1361 = vpow2.f32 %v793_v63  ;;  %v727_v45 = vsub.f32 %v1684_v1, %v631_v6  ;;  %v728_v7 = vsub.f32 %v1682_v0, %v631_v6  ;;  %v689_v8 = vrot.slane %v688_v49, 4  ;;  %v1712_v34 = vpop.xlane.xlu0 %563 }
 0x1bc   :  { %1363 = vpow2.f32 %v759_v4  ;;  %v686_v9 = vrot.slane %v685_v54, 1  ;;  %v636_v10 = vmax.f32 %v634_v3, %v635_v55  ;;  %v639_v3 = vmax.f32 %v1712_v34, %v1710_v33 }
 0x1bd   :  { %1365 = vpow2.f32 %v761_v5  ;;  %v763_v11 = vmul.f32 1.442695, %v727_v45  ;;  %v765_v12 = vmul.f32 1.442695, %v728_v7  ;;  %v690_v29 = vmax.f32 %v688_v49, %v689_v8 }
 0x1be   :  { %v687_v15 = vmax.f32 %v685_v54, %v686_v9  ;;  %v637_v31 = vrot.slane %v636_v10, 1  ;;  %v1720_v42 = vpop.xlane.xlu1 %597 }
 0x1bf   :  { %v1352_v30 = vpop.eup %1351  ;;  %1367 = vpow2.f32 %v763_v11  ;;  %v691_v37 = vrot.slane %v690_v29, 2  ;;  %v1722_v48 = vpop.xlane.xlu0 %595 }
 0x1c0   :  { %v1354_v32 = vpop.eup %1353  ;;  %v819_v1 = vmul.f32 %v1352_v30, %v1600_v16  ;;  %1369 = vpow2.f32 %v765_v12  ;;  %v743_v36 = vsub.f32 %v1690_v14, %v687_v15  ;;  %v744_v40 = vsub.f32 %v1688_v13, %v687_v15 }
 0x1c1   :  { %v820_v0 = vmul.f32 %v1354_v32, %v1604_v18  ;;  %v963_v35 = vadd.f32 %v1354_v32, %v1352_v30  ;;  %v638_v44 = vmax.f32 %v636_v10, %v637_v31  ;;  %v692_v53 = vmax.f32 %v690_v29, %v691_v37 }
 0x1c2   :  { %v795_v18 = vmul.f32 1.442695, %v743_v36  ;;  %v797_v57 = vmul.f32 1.442695, %v744_v40 }
 0x1c3   :  { %v1356_v38 = vpop.eup %1355  ;;  %v964_v39 = vrot.slane %v963_v35, 4  ;;  %v851_v50 = vadd.f32 %v820_v0, %v819_v1  ;;  %v729_v13 = vsub.f32 %v1696_v43, %v638_v44  ;;  %v730_v2 = vsub.f32 %v1694_v41, %v638_v44  ;;  %v1732_v41 = vpop.xlane.xlu1 %569 }
 0x1c4   :  { %v1358_v46 = vpop.eup %1357  ;;  %v835_v47 = vmul.f32 %v1356_v38, %v1602_v17  ;;  %1371 = vpow2.f32 %v795_v18  ;;  %v693_v55 = vrot.slane %v692_v53, 1  ;;  %v1734_v9 = vpop.xlane.xlu0 %567  ;;  %v640_v1 = vrot.slane %v639_v3, 4 }
 0x1c5   :  { %v836_v51 = vmul.f32 %v1358_v46, %v1606_v19  ;;  %v1019_v16 = vadd.f32 %v1358_v46, %v1356_v38  ;;  %v965_v52 = vadd.f32 %v964_v39, %v963_v35  ;;  %v852_v63 = vrot.slane %v851_v50, 4 }
 0x1c6   :  { %1373 = vpow2.f32 %v797_v57  ;;  %v767_v43 = vmul.f32 1.442695, %v729_v13  ;;  %v769_v35 = vmul.f32 1.442695, %v730_v2 }
 0x1c7   :  { %v1360_v14 = vpop.eup %1359  ;;  %v907_v56 = vadd.f32 %v836_v51, %v835_v47  ;;  %v1020_v61 = vrot.slane %v1019_v16, 4  ;;  %v966_v5 = vrot.slane %v965_v52, 2  ;;  %v853_v10 = vadd.f32 %v852_v63, %v851_v50  ;;  %v1738_v50 = vpop.xlane.xlu1 %601 }
 0x1c8   :  { %v1362_v58 = vpop.eup %1361  ;;  %v837_v17 = vmul.f32 %v1360_v14, %v1610_v21  ;;  %1375 = vpow2.f32 %v767_v43  ;;  %v1740_v51 = vpop.xlane.xlu0 %599 }
 0x1c9   :  { %v1364_v62 = vpop.eup %1363  ;;  %v1021_v19 = vadd.f32 %v1020_v61, %v1019_v16  ;;  %v838_v6 = vmul.f32 %v1362_v58, %v1620_v23  ;;  %v1026_v49 = vadd.f32 %v1362_v58, %v1360_v14  ;;  %v908_v11 = vrot.slane %v907_v56, 4 }
 0x1ca   :  { %v1366_v4 = vpop.eup %1365  ;;  %v821_v54 = vmul.f32 %v1364_v62, %v1608_v20  ;;  %v967_v15 = vadd.f32 %v966_v5, %v965_v52  ;;  %v854_v36 = vrot.slane %v853_v10, 2  ;;  %1377 = vpow2.f32 %v769_v35 }
 0x1cb   :  { %v914_v21 = vadd.f32 %v838_v6, %v837_v17  ;;  %v1027_v45 = vrot.slane %v1026_v49, 4  ;;  %v822_v7 = vmul.f32 %v1366_v4, %v1617_v22  ;;  %v970_v8 = vadd.f32 %v1366_v4, %v1364_v62  ;;  %v1748_v6 = vpop.xlane.xlu1 %573 }
 0x1cc   :  { %v1022_v12 = vrot.slane %v1021_v19, 2  ;;  %v1368_v23 = vpop.eup %1367  ;;  %v694_v22 = vmax.f32 %v692_v53, %v693_v55  ;;  %v909_v37 = vadd.f32 %v908_v11, %v907_v56  ;;  %v968_v40 = vrot.slane %v967_v15, 1 }
 0x1cd   :  { %v915_v29 = vrot.slane %v914_v21, 4  ;;  %v1028_v30 = vadd.f32 %v1027_v45, %v1026_v49  ;;  %v971_v20 = vrot.slane %v970_v8, 4  ;;  %v1370_v31 = vpop.eup %1369  ;;  %v858_v32 = vadd.f32 %v822_v7, %v821_v54  ;;  %v1750_v49 = vpop.xlane.xlu0 %571 }
 0x1ce   :  { %v1023_v38 = vadd.f32 %v1022_v12, %v1021_v19  ;;  %v823_v46 = vmul.f32 %v1368_v23, %v1622_v24  ;;  %v824_v47 = vmul.f32 %v1370_v31, %v1629_v26  ;;  %v977_v52 = vadd.f32 %v1370_v31, %v1368_v23 }
 0x1cf   :  { %v1029_v0 = vrot.slane %v1028_v30, 2  ;;  %v972_v39 = vadd.f32 %v971_v20, %v970_v8  ;;  %v916_v44 = vadd.f32 %v915_v29, %v914_v21  ;;  %v859_v16 = vrot.slane %v858_v32, 4 }
 0x1d0   :  { %v641_v14 = vmax.f32 %v639_v3, %v640_v1  ;;  %v1742_v53 = vadd.f32 %v854_v36, %v853_v10  ;;  %v910_v56 = vrot.slane %v909_v37, 2  ;;  %v1024_v61 = vrot.slane %v1023_v38, 1 }
 0x1d1   :  { %v1030_v18 = vadd.f32 %v1029_v0, %v1028_v30  ;;  %v973_v57 = vrot.slane %v972_v39, 2  ;;  %v969_v13 = vadd.f32 %v968_v40, %v967_v15  ;;  %v917_v58 = vrot.slane %v916_v44, 2  ;;  %v1372_v26 = vpop.eup %1371 }
 0x1d2   :  { %v865_v17 = vadd.f32 %v824_v47, %v823_v46  ;;  %v745_v24 = vsub.f32 %v1704_v60, %v694_v22  ;;  %v860_v62 = vadd.f32 %v859_v16, %v858_v32  ;;  %v978_v63 = vrot.slane %v977_v52, 4 }
 0x1d3   :  { %v1374_v19 = vpop.eup %1373  ;;  %v1031_v2 = vrot.slane %v1030_v18, 1  ;;  %v746_v4 = vsub.f32 %v1702_v59, %v694_v22  ;;  %v642_v5 = vrot.slane %v641_v14, 2  ;;  %v695_v3 = vmax.f32 %v1722_v48, %v1720_v42 }
 0x1d4   :  { %v856_v54 = vrot.slane %v1742_v53, 1  ;;  %v1753_v43 = vadd.f32 %v910_v56, %v909_v37  ;;  %v1025_v60 = vadd.f32 %v1024_v61, %v1023_v38  ;;  %v974_v55 = vadd.f32 %v973_v57, %v972_v39 }
 0x1d5   :  { %1379 = vrcp.f32 %v969_v13  ;;  %v1755_v21 = vadd.f32 %v917_v58, %v916_v44  ;;  %v866_v45 = vrot.slane %v865_v17, 4  ;;  %v799_v7 = vmul.f32 1.442695, %v745_v24  ;;  %v1376_v29 = vpop.eup %1375 }
 0x1d6   :  { %v861_v59 = vrot.slane %v860_v62, 2  ;;  %v979_v8 = vadd.f32 %v978_v63, %v977_v52  ;;  %v839_v10 = vmul.f32 %v1372_v26, %v1624_v25  ;;  %v840_v11 = vmul.f32 %v1374_v19, %v1632_v27  ;;  %v1765_v25 = vpop.xlane.xlu1 %605  ;;  %v1767_v27 = vpop.xlane.xlu0 %603 }
 0x1d7   :  { %v1032_v12 = vadd.f32 %v1031_v2, %v1030_v18  ;;  %v1759_v23 = vadd.f32 %v1374_v19, %v1372_v26  ;;  %1381 = vpow2.f32 %v799_v7  ;;  %v801_v15 = vmul.f32 1.442695, %v746_v4  ;;  %v1776_v44 = vpop.eup %1377 }
 0x1d8   :  { %v912_v30 = vrot.slane %v1753_v43, 1  ;;  %1383 = vrcp.f32 %v1025_v60  ;;  %v975_v20 = vrot.slane %v974_v55, 1  ;;  %v643_v31 = vmax.f32 %v641_v14, %v642_v5 }
 0x1d9   :  { %v919_v32 = vrot.slane %v1755_v21, 1  ;;  %v1763_v1 = vadd.f32 %v866_v45, %v865_v17  ;;  %1385 = vpow2.f32 %v801_v15  ;;  %v696_v0 = vrot.slane %v695_v3, 4 }
 0x1da   :  { %v1769_v35 = vadd.f32 %v861_v59, %v860_v62  ;;  %v980_v22 = vrot.slane %v979_v8, 2  ;;  %v1771_v36 = vadd.f32 %v840_v11, %v839_v10  ;;  %v644_v37 = vrot.slane %v643_v31, 1  ;;  %v1791_v19 = vpop.xlane.xlu1 %577  ;;  %v1793_v2 = vpop.xlane.xlu0 %575 }
 0x1db   :  { %1387 = vrcp.f32 %v1032_v12  ;;  %v1034_v38 = vrot.slane %v1759_v23, 4  ;;  %v697_v39 = vmax.f32 %v695_v3, %v696_v0  ;;  %v646_v40 = vmax.f32 %v1734_v9, %v1732_v41 }
 0x1dc   :  { %v976_v46 = vadd.f32 %v975_v20, %v974_v55  ;;  %v645_v47 = vmax.f32 %v643_v31, %v644_v37  ;;  %v702_v16 = vmax.f32 %v1740_v51, %v1738_v50  ;;  %v653_v52 = vmax.f32 %v1750_v49, %v1748_v6 }
 0x1dd   :  { %v868_v18 = vrot.slane %v1763_v1, 2  ;;  %v1784_v14 = vmul.f32 %v1376_v29, %v1634_v28  ;;  %v698_v56 = vrot.slane %v697_v39, 2  ;;  %v647_v61 = vrot.slane %v646_v40, 4 }
 0x1de   :  { %v1786_v57 = vadd.f32 %v980_v22, %v979_v8  ;;  %v731_v13 = vsub.f32 %v1712_v34, %v645_v47  ;;  %v732_v58 = vsub.f32 %v1710_v33, %v645_v47  ;;  %v703_v17 = vrot.slane %v702_v16, 4 }
 0x1df   :  { %v984_v24 = vadd.f32 %v1776_v44, %v1376_v29  ;;  %v699_v26 = vmax.f32 %v697_v39, %v698_v56  ;;  %v648_v62 = vmax.f32 %v646_v40, %v647_v61  ;;  %v654_v63 = vrot.slane %v653_v52, 4 }
 0x1e0   :  { %v771_v28 = vmul.f32 1.442695, %v731_v13  ;;  %v773_v4 = vmul.f32 1.442695, %v732_v58  ;;  %v704_v5 = vmax.f32 %v702_v16, %v703_v17  ;;  %v709_v3 = vmax.f32 %v1767_v27, %v1765_v25 }
 0x1e1   :  { %v922_v34 = vrot.slane %v1771_v36, 4  ;;  %v700_v60 = vrot.slane %v699_v26, 1  ;;  %v649_v33 = vrot.slane %v648_v62, 2  ;;  %v655_v55 = vmax.f32 %v653_v52, %v654_v63 }
 0x1e2   :  { %v1798_v45 = vpop.eup %1379  ;;  %1389 = vpow2.f32 %v771_v28  ;;  %v705_v7 = vrot.slane %v704_v5, 2  ;;  %v710_v59 = vrot.slane %v709_v3, 4  ;;  %v660_v8 = vmax.f32 %v1793_v2, %v1791_v19 }
 0x1e3   :  { %v985_v10 = vrot.slane %v984_v24, 4  ;;  %v701_v11 = vmax.f32 %v699_v26, %v700_v60  ;;  %v650_v12 = vmax.f32 %v648_v62, %v649_v33  ;;  %v656_v15 = vrot.slane %v655_v55, 2  ;;  %v1447_v60 = vld [vmem:[#allocation2 + $0x38] sm:$0xff] }
 0x1e4   :  { %v1382_v29 = vpop.eup %1381  ;;  %1391 = vpow2.f32 %v773_v4  ;;  %v706_v20 = vmax.f32 %v704_v5, %v705_v7  ;;  %v711_v31 = vmax.f32 %v709_v3, %v710_v59  ;;  %v661_v0 = vrot.slane %v660_v8, 4 }
 0x1e5   :  { %v1802_v22 = vpop.eup %1383  ;;  %v1035_v37 = vadd.f32 %v1034_v38, %v1759_v23  ;;  %v747_v39 = vsub.f32 %v1722_v48, %v701_v11  ;;  %v748_v40 = vsub.f32 %v1720_v42, %v701_v11  ;;  %v651_v47 = vrot.slane %v650_v12, 1 }
 0x1e6   :  { %v1386_v16 = vpop.eup %1385  ;;  %v707_v52 = vrot.slane %v706_v20, 1  ;;  %v657_v56 = vmax.f32 %v655_v55, %v656_v15  ;;  %v712_v61 = vrot.slane %v711_v31, 2  ;;  %v662_v13 = vmax.f32 %v660_v8, %v661_v0  ;;  %v1816_v0 = vpop.xlane.xlu1 %609 }
 0x1e7   :  { %1393 = vrcp.f32 %v976_v46  ;;  %v1040_v58 = vadd.f32 %v1386_v16, %v1382_v29  ;;  %v803_v17 = vmul.f32 1.442695, %v747_v39  ;;  %v805_v26 = vmul.f32 1.442695, %v748_v40  ;;  %v1448_v39 = vld [vmem:[#allocation2 + $0xb0] sm:$0xff] }
 0x1e8   :  { %v1807_v62 = vpop.eup %1387  ;;  %v986_v63 = vadd.f32 %v985_v10, %v984_v24  ;;  %v652_v28 = vmax.f32 %v650_v12, %v651_v47  ;;  %v708_v4 = vmax.f32 %v706_v20, %v707_v52  ;;  %v658_v23 = vrot.slane %v657_v56, 1  ;;  %v1449_v47 = vld [vmem:[#allocation2 + $0xb8] sm:$0xff] }
 0x1e9   :  { %v1041_v38 = vrot.slane %v1040_v58, 4  ;;  %1395 = vpow2.f32 %v803_v17  ;;  %v713_v48 = vmax.f32 %v711_v31, %v712_v61  ;;  %v663_v42 = vrot.slane %v662_v13, 2 }
 0x1ea   :  { %1397 = vpow2.f32 %v805_v26  ;;  %v733_v5 = vsub.f32 %v1734_v9, %v652_v28  ;;  %v734_v3 = vsub.f32 %v1732_v41, %v652_v28  ;;  %v749_v46 = vsub.f32 %v1740_v51, %v708_v4 }
 0x1eb   :  { %v826_v33 = vmul.f32 %v1447_v60, %v1776_v44  ;;  %v1042_v55 = vadd.f32 %v1041_v38, %v1040_v58  ;;  %v750_v24 = vsub.f32 %v1738_v50, %v708_v4  ;;  %v659_v7 = vmax.f32 %v657_v56, %v658_v23  ;;  %v1818_v44 = vpop.xlane.xlu0 %607 }
 0x1ec   :  { %v775_v59 = vmul.f32 1.442695, %v733_v5  ;;  %v777_v8 = vmul.f32 1.442695, %v734_v3  ;;  %v807_v10 = vmul.f32 1.442695, %v749_v46  ;;  %v664_v11 = vmax.f32 %v662_v13, %v663_v42 }
 0x1ed   :  { %v1036_v12 = vrot.slane %v1035_v37, 2  ;;  %v987_v15 = vrot.slane %v986_v63, 2  ;;  %v809_v20 = vmul.f32 1.442695, %v750_v24  ;;  %v735_v9 = vsub.f32 %v1750_v49, %v659_v7 }
 0x1ee   :  { %1399 = vpow2.f32 %v775_v59  ;;  %v736_v41 = vsub.f32 %v1748_v6, %v659_v7  ;;  %v714_v51 = vrot.slane %v713_v48, 1  ;;  %v665_v31 = vrot.slane %v664_v11, 1 }
 0x1ef   :  { %v1390_v50 = vpop.eup %1389  ;;  %v841_v40 = vmul.f32 %v1448_v39, %v1382_v29  ;;  %v842_v52 = vmul.f32 %v1449_v47, %v1386_v16  ;;  %1401 = vpow2.f32 %v777_v8  ;;  %v779_v56 = vmul.f32 1.442695, %v735_v9 }
 0x1f0   :  { %v1043_v61 = vrot.slane %v1042_v55, 2  ;;  %1403 = vpow2.f32 %v807_v10  ;;  %v781_v13 = vmul.f32 1.442695, %v736_v41  ;;  %v715_v49 = vmax.f32 %v713_v48, %v714_v51  ;;  %v1450_v10 = vld [vmem:[#allocation2 + $0x40] sm:$0xff] }
 0x1f1   :  { %v1392_v58 = vpop.eup %1391  ;;  %v872_v6 = vadd.f32 %v826_v33, %v1784_v14  ;;  %1405 = vpow2.f32 %v809_v20  ;;  %v666_v17 = vmax.f32 %v664_v11, %v665_v31  ;;  %v716_v26 = vmax.f32 %v1818_v44, %v1816_v0 }
 0x1f2   :  { %v1037_v28 = vadd.f32 %v1036_v12, %v1035_v37  ;;  %v991_v4 = vadd.f32 %v1392_v58, %v1390_v50  ;;  %1407 = vpow2.f32 %v779_v56  ;;  %v751_v29 = vsub.f32 %v1767_v27, %v715_v49  ;;  %v1451_v12 = vld [vmem:[#allocation2 + $0x48] sm:$0xff] }
 0x1f3   :  { %v988_v16 = vadd.f32 %v987_v15, %v986_v63  ;;  %1409 = vpow2.f32 %v781_v13  ;;  %v752_v23 = vsub.f32 %v1765_v25, %v715_v49  ;;  %v737_v38 = vsub.f32 %v1793_v2, %v666_v17 }
 0x1f4   :  { %v1826_v48 = vpop.eup %1393  ;;  %v928_v42 = vadd.f32 %v842_v52, %v841_v40  ;;  %v1044_v14 = vadd.f32 %v1043_v61, %v1042_v55  ;;  %v811_v5 = vmul.f32 1.442695, %v751_v29  ;;  %v738_v3 = vsub.f32 %v1791_v19, %v666_v17 }
 0x1f5   :  { %v992_v46 = vrot.slane %v991_v4, 4  ;;  %v813_v60 = vmul.f32 1.442695, %v752_v23  ;;  %v783_v37 = vmul.f32 1.442695, %v737_v38  ;;  %v717_v33 = vrot.slane %v716_v26, 4 }
 0x1f6   :  { %v1829_v24 = vpop.eup %1395  ;;  %v982_v27 = vrot.slane %v1786_v57, 1  ;;  %v1835_v25 = vadd.f32 %v922_v34, %v1771_v36  ;;  %1411 = vpow2.f32 %v811_v5  ;;  %v785_v2 = vmul.f32 1.442695, %v738_v3 }
 0x1f7   :  { %v1837_v63 = vpop.eup %1397  ;;  %v1038_v55 = vrot.slane %v1037_v28, 1  ;;  %v873_v7 = vrot.slane %v872_v6, 4  ;;  %1413 = vpow2.f32 %v813_v60  ;;  %v718_v19 = vmax.f32 %v716_v26, %v717_v33 }
 0x1f8   :  { %v989_v59 = vrot.slane %v988_v16, 1  ;;  %v929_v8 = vrot.slane %v928_v42, 4  ;;  %v827_v11 = vmul.f32 %v1450_v10, %v1390_v50  ;;  %v828_v15 = vmul.f32 %v1451_v12, %v1392_v58  ;;  %v1454_v10 = vld [vmem:[#allocation2 + $0x60] sm:$0xff]  ;;  %v1455_v12 = vld [vmem:[#allocation2 + $0x68] sm:$0xff] }
 0x1f9   :  { %v1045_v20 = vrot.slane %v1044_v14, 1  ;;  %v993_v9 = vadd.f32 %v992_v46, %v991_v4  ;;  %1415 = vpow2.f32 %v783_v37  ;;  %v719_v41 = vrot.slane %v718_v19, 2 }
 0x1fa   :  { %v863_v36 = vrot.slane %v1769_v35, 1  ;;  %v983_v34 = vadd.f32 %v982_v27, %v1786_v57  ;;  %v1047_v51 = vadd.f32 %v1837_v63, %v1829_v24  ;;  %1417 = vpow2.f32 %v785_v2 }
 0x1fb   :  { %v1400_v31 = vpop.eup %1399  ;;  %v1846_v39 = vadd.f32 %v868_v18, %v1763_v1  ;;  %v1039_v50 = vadd.f32 %v1038_v55, %v1037_v28  ;;  %v1848_v40 = vadd.f32 %v873_v7, %v872_v6  ;;  %v720_v47 = vmax.f32 %v718_v19, %v719_v41  ;;  %v1452_v18 = vld [vmem:[#allocation2 + $0x50] sm:$0xff]  ;;  %v1453_v28 = vld [vmem:[#allocation2 + $0x58] sm:$0xff] }
 0x1fc   :  { %v1402_v52 = vpop.eup %1401  ;;  %v924_v56 = vrot.slane %v1835_v25, 2  ;;  %v990_v61 = vadd.f32 %v989_v59, %v988_v16  ;;  %v1851_v13 = vadd.f32 %v929_v8, %v928_v42  ;;  %v879_v57 = vadd.f32 %v828_v15, %v827_v11 }
 0x1fd   :  { %v1853_v49 = vpop.eup %1403  ;;  %v1046_v58 = vadd.f32 %v1045_v20, %v1044_v14  ;;  %v994_v17 = vrot.slane %v993_v9, 2  ;;  %v998_v26 = vadd.f32 %v1402_v52, %v1400_v31  ;;  %v721_v4 = vrot.slane %v720_v47, 1 }
 0x1fe   :  { %v1855_v29 = vpop.eup %1405  ;;  %1419 = vrcp.f32 %v983_v34  ;;  %v1048_v1 = vrot.slane %v1047_v51, 4  ;;  %v829_v6 = vmul.f32 %v1452_v18, %v1400_v31  ;;  %v830_v23 = vmul.f32 %v1453_v28, %v1402_v52  ;;  %v1457_v31 = vld [vmem:[#allocation2 + $0xc8] sm:$0xff] }
 0x1ff   :  { %v1408_v38 = vpop.eup %1407  ;;  %1421 = vrcp.f32 %v1039_v50  ;;  %v875_v16 = vrot.slane %v1848_v40, 2  ;;  %v999_v42 = vrot.slane %v998_v26, 4  ;;  %v1054_v5 = vadd.f32 %v1855_v29, %v1853_v49 }
 0x200   :  { %v1410_v14 = vpop.eup %1409  ;;  %1423 = vrcp.f32 %v990_v61  ;;  %v931_v3 = vrot.slane %v1851_v13, 2  ;;  %v880_v46 = vrot.slane %v879_v57, 4  ;;  %v722_v60 = vmax.f32 %v720_v47, %v721_v4 }
 0x201   :  { %1425 = vrcp.f32 %v1046_v58  ;;  %v995_v37 = vadd.f32 %v994_v17, %v993_v9  ;;  %v1000_v33 = vadd.f32 %v999_v42, %v998_v26  ;;  %v1055_v27 = vrot.slane %v1054_v5, 4  ;;  %v1456_v9 = vld [vmem:[#allocation2 + $0xc0] sm:$0xff] }
 0x202   :  { %v1049_v2 = vadd.f32 %v1048_v1, %v1047_v51  ;;  %v886_v55 = vadd.f32 %v830_v23, %v829_v6  ;;  %v1005_v7 = vadd.f32 %v1410_v14, %v1408_v38  ;;  %v753_v19 = vsub.f32 %v1818_v44, %v722_v60 }
 0x203   :  { %v1862_v59 = vpop.eup %1411  ;;  %v1001_v8 = vrot.slane %v1000_v33, 2  ;;  %v831_v11 = vmul.f32 %v1454_v10, %v1408_v38  ;;  %v832_v15 = vmul.f32 %v1455_v12, %v1410_v14  ;;  %v754_v20 = vsub.f32 %v1816_v0, %v722_v60  ;;  %v1458_v14 = vld [vmem:[#allocation2 + $0x70] sm:$0xff] }
 0x204   :  { %v1865_v41 = vpop.eup %1413  ;;  %v1867_v34 = vadd.f32 %v880_v46, %v879_v57  ;;  %v843_v51 = vmul.f32 %v1456_v9, %v1829_v24  ;;  %v844_v50 = vmul.f32 %v1457_v31, %v1837_v63  ;;  %v1006_v44 = vrot.slane %v1005_v7, 4 }
 0x205   :  { %v1002_v47 = vadd.f32 %v1001_v8, %v1000_v33  ;;  %v1056_v52 = vadd.f32 %v1055_v27, %v1054_v5  ;;  %v1061_v61 = vadd.f32 %v1865_v41, %v1862_v59  ;;  %v870_v58 = vrot.slane %v1846_v39, 1 }
 0x206   :  { %v1416_v17 = vpop.eup %1415  ;;  %v996_v0 = vrot.slane %v995_v37, 1  ;;  %v1007_v26 = vadd.f32 %v1006_v44, %v1005_v7  ;;  %v815_v4 = vmul.f32 1.442695, %v753_v19  ;;  %v817_v57 = vmul.f32 1.442695, %v754_v20  ;;  %v1459_v7 = vld [vmem:[#allocation2 + $0x78] sm:$0xff] }
 0x207   :  { %v1418_v1 = vpop.eup %1417  ;;  %v1050_v18 = vrot.slane %v1049_v2, 2  ;;  %v887_v6 = vrot.slane %v886_v55, 4  ;;  %v893_v24 = vadd.f32 %v832_v15, %v831_v11  ;;  %v1062_v28 = vrot.slane %v1061_v61, 4 }
 0x208   :  { %v1003_v23 = vrot.slane %v1002_v47, 1  ;;  %v1008_v63 = vrot.slane %v1007_v26, 2  ;;  %v1012_v38 = vadd.f32 %v1418_v1, %v1416_v17  ;;  %1427 = vpow2.f32 %v815_v4 }
 0x209   :  { %v1057_v42 = vrot.slane %v1056_v52, 2  ;;  %v1063_v5 = vadd.f32 %v1062_v28, %v1061_v61  ;;  %v833_v46 = vmul.f32 %v1458_v14, %v1416_v17  ;;  %1429 = vpow2.f32 %v817_v57 }
 0x20a   :  { %v1874_v60 = vadd.f32 %v844_v50, %v843_v51  ;;  %v1009_v33 = vadd.f32 %v1008_v63, %v1007_v26  ;;  %v1013_v27 = vrot.slane %v1012_v38, 4  ;;  %v834_v19 = vmul.f32 %v1459_v7, %v1418_v1 }
 0x20b   :  { %v1876_v8 = vpop.eup %1419  ;;  %v997_v10 = vadd.f32 %v996_v0, %v995_v37  ;;  %v1051_v11 = vadd.f32 %v1050_v18, %v1049_v2  ;;  %v1064_v12 = vrot.slane %v1063_v5, 2  ;;  %v1879_v15 = vadd.f32 %v875_v16, %v1848_v40  ;;  %v1460_v37 = vld [vmem:[#allocation2 + $0xd0] sm:$0xff]  ;;  %v1461_v40 = vld [vmem:[#allocation2 + $0xd8] sm:$0xff] }
 0x20c   :  { %v1881_v20 = vpop.eup %1421  ;;  %v1004_v9 = vadd.f32 %v1003_v23, %v1002_v47  ;;  %v1010_v31 = vrot.slane %v1009_v33, 1  ;;  %v1014_v44 = vadd.f32 %v1013_v27, %v1012_v38  ;;  %v894_v61 = vrot.slane %v893_v24, 4  ;;  %v1463_v38 = vld [vmem:[#allocation2 + $0xe8] sm:$0xff] }
 0x20d   :  { %v1883_v51 = vpop.eup %1423  ;;  %v1058_v50 = vadd.f32 %v1057_v42, %v1056_v52  ;;  %v882_v17 = vrot.slane %v1867_v34, 2  ;;  %v888_v26 = vadd.f32 %v887_v6, %v886_v55  ;;  %v900_v4 = vadd.f32 %v834_v19, %v833_v46  ;;  %v1462_v52 = vld [vmem:[#allocation2 + $0xe0] sm:$0xff] }
 0x20e   :  { %v1886_v57 = vpop.eup %1425  ;;  %v845_v2 = vmul.f32 %v1460_v37, %v1853_v49  ;;  %v846_v16 = vmul.f32 %v1461_v40, %v1855_v29  ;;  %v1011_v0 = vadd.f32 %v1010_v31, %v1009_v33  ;;  %v1015_v47 = vrot.slane %v1014_v44, 2 }
 0x20f   :  { %1431 = vrcp.f32 %v997_v10  ;;  %v1065_v1 = vadd.f32 %v1064_v12, %v1063_v5  ;;  %v895_v18 = vadd.f32 %v894_v61, %v893_v24  ;;  %v901_v28 = vrot.slane %v900_v4, 4 }
 0x210   :  { %v1052_v23 = vrot.slane %v1051_v11, 1  ;;  %1433 = vrcp.f32 %v1004_v9  ;;  %v847_v55 = vmul.f32 %v1462_v52, %v1862_v59  ;;  %v1016_v6 = vadd.f32 %v1015_v47, %v1014_v44  ;;  %v1464_v44 = vld [vmem:[#allocation2 + $0xf0] sm:$0xff] }
 0x211   :  { %v1059_v63 = vrot.slane %v1058_v50, 1  ;;  %1435 = vrcp.f32 %v1011_v0  ;;  %v848_v49 = vmul.f32 %v1463_v38, %v1865_v41  ;;  %v889_v42 = vrot.slane %v888_v26, 2 }
 0x212   :  { %v1017_v14 = vrot.slane %v1016_v6, 1  ;;  %v857_v29 = vadd.f32 %v856_v54, %v1742_v53  ;;  %v883_v24 = vadd.f32 %v882_v17, %v1867_v34  ;;  %v902_v5 = vadd.f32 %v901_v28, %v900_v4  ;;  %v1465_v4 = vld [vmem:[#allocation2 + $0xf8] sm:$0xff] }
 0x213   :  { %v936_v46 = vrot.slane %v1874_v60, 4  ;;  %v1066_v33 = vrot.slane %v1065_v1, 1  ;;  %v864_v59 = vadd.f32 %v863_v36, %v1769_v35  ;;  %v896_v27 = vrot.slane %v895_v18, 2 }
 0x214   :  { %v1053_v7 = vadd.f32 %v1052_v23, %v1051_v11  ;;  %v942_v19 = vadd.f32 %v846_v16, %v845_v2  ;;  %v1018_v41 = vadd.f32 %v1017_v14, %v1016_v6  ;;  %v877_v10 = vrot.slane %v1879_v15, 1 }
 0x215   :  { %v1428_v12 = vpop.eup %1427  ;;  %v1060_v9 = vadd.f32 %v1059_v63, %v1058_v50  ;;  %v949_v53 = vadd.f32 %v848_v49, %v847_v55  ;;  %v871_v54 = vadd.f32 %v870_v58, %v1846_v39  ;;  %v890_v34 = vadd.f32 %v889_v42, %v888_v26 }
 0x216   :  { %v1430_v31 = vpop.eup %1429  ;;  %v849_v61 = vmul.f32 %v1464_v44, %v1428_v12  ;;  %v884_v17 = vrot.slane %v883_v24, 1  ;;  %v903_v35 = vrot.slane %v902_v5, 2  ;;  %1437 = vrcp.f32 %v1018_v41 }
 0x217   :  { %v1067_v36 = vadd.f32 %v1066_v33, %v1065_v1  ;;  %v1068_v11 = vadd.f32 %v1430_v31, %v1428_v12  ;;  %v850_v37 = vmul.f32 %v1465_v4, %v1430_v31  ;;  %v897_v2 = vadd.f32 %v896_v27, %v895_v18 }
 0x218   :  { %v937_v50 = vadd.f32 %v936_v46, %v1874_v60  ;;  %1439 = vrcp.f32 %v1053_v7  ;;  %v943_v40 = vrot.slane %v942_v19, 4  ;;  %v878_v39 = vadd.f32 %v877_v10, %v1879_v15 }
 0x219   :  { %1441 = vrcp.f32 %v1060_v9  ;;  %v1069_v58 = vrot.slane %v1068_v11, 4  ;;  %v891_v26 = vrot.slane %v890_v34, 1  ;;  %v956_v16 = vadd.f32 %v850_v37, %v849_v61 }
 0x21a   :  { %v904_v0 = vadd.f32 %v903_v35, %v902_v5  ;;  %v913_v47 = vadd.f32 %v912_v30, %v1753_v43  ;;  %v920_v1 = vadd.f32 %v919_v32, %v1755_v21  ;;  %v950_v60 = vrot.slane %v949_v53, 4 }
 0x21b   :  { %1443 = vrcp.f32 %v1067_v36  ;;  %v1070_v18 = vadd.f32 %v1069_v58, %v1068_v11  ;;  %v885_v15 = vadd.f32 %v884_v17, %v883_v24  ;;  %v898_v28 = vrot.slane %v897_v2, 1 }
 0x21c   :  { %v1432_v23 = vpop.eup %1431  ;;  %v944_v52 = vadd.f32 %v943_v40, %v942_v19  ;;  %v1092_v55 = vmul.f32 %v1826_v48, %v864_v59  ;;  %v1099_v6 = vmul.f32 %v1802_v22, %v913_v47  ;;  %v1100_v63 = vmul.f32 %v1807_v62, %v920_v1 }
 0x21d   :  { %v1434_v38 = vpop.eup %1433  ;;  %v1071_v43 = vrot.slane %v1070_v18, 2  ;;  %v892_v30 = vadd.f32 %v891_v26, %v890_v34  ;;  %v957_v49 = vrot.slane %v956_v16, 4  ;;  %v1093_v21 = vmul.f32 %v1876_v8, %v871_v54 }
 0x21e   :  { %v1436_v32 = vpop.eup %1435  ;;  %v905_v42 = vrot.slane %v904_v0, 1  ;;  %v951_v14 = vadd.f32 %v950_v60, %v949_v53  ;;  %v1091_v24 = vmul.f32 %v1798_v45, %v857_v29  ;;  %v1094_v5 = vmul.f32 %v1883_v51, %v878_v39 }
 0x21f   :  { %v1072_v46 = vadd.f32 %v1071_v43, %v1070_v18  ;;  %v899_v33 = vadd.f32 %v898_v28, %v897_v2  ;;  %v1095_v48 = vmul.f32 %v1432_v23, %v885_v15  ;;  %v1137_v22 = vsel %vm1123_vm0, %v1100_v63, %v1099_v6 }
 0x220   :  { %v938_v59 = vrot.slane %v937_v50, 2  ;;  %v945_v62 = vrot.slane %v944_v52, 2  ;;  %v1096_v27 = vmul.f32 %v1434_v38, %v892_v30  ;;  %v1124_v7 = vsel %vm1123_vm0, %v1092_v55, %v1091_v24 }
 0x221   :  { %v1073_v19 = vrot.slane %v1072_v46, 1  ;;  %v958_v41 = vadd.f32 %v957_v49, %v956_v16  ;;  %v1097_v8 = vmul.f32 %v1436_v32, %v899_v33  ;;  %v1126_v10 = vsel %vm1125_vm1, %v1093_v21, %v1124_v7 }
 0x222   :  { %v925_v45 = vadd.f32 %v924_v56, %v1835_v25  ;;  %v906_v51 = vadd.f32 %v905_v42, %v904_v0  ;;  %v952_v29 = vrot.slane %v951_v14, 2  ;;  %v1128_v12 = vsel %vm1127_vm2, %v1094_v5, %v1126_v10 }
 0x223   :  { %v1438_v9 = vpop.eup %1437  ;;  %v1074_v53 = vadd.f32 %v1073_v19, %v1072_v46  ;;  %v932_v54 = vadd.f32 %v931_v3, %v1851_v13  ;;  %v1130_v34 = vsel %vm1129_vm3, %v1095_v48, %v1128_v12  ;;  %v939_v31 = vadd.f32 %v938_v59, %v937_v50 }
 0x224   :  { %v1098_v44 = vmul.f32 %v1438_v9, %v906_v51  ;;  %v1132_v61 = vsel %vm1131_vm4, %v1096_v27, %v1130_v34  ;;  %v946_v25 = vadd.f32 %v945_v62, %v944_v52  ;;  %v959_v56 = vrot.slane %v958_v41, 2 }
 0x225   :  { %v1440_v17 = vpop.eup %1439  ;;  %1445 = vrcp.f32 %v1074_v53  ;;  %v1134_v35 = vsel %vm1133_vm5, %v1097_v8, %v1132_v61  ;;  %v926_v11 = vrot.slane %v925_v45, 1  ;;  %v953_v4 = vadd.f32 %v952_v29, %v951_v14 }
 0x226   :  { %v1442_v36 = vpop.eup %1441  ;;  %v1136_v37 = vsel %vm1135_vm6, %v1098_v44, %v1134_v35  ;;  %v933_v2 = vrot.slane %v932_v54, 1  ;;  %v940_v3 = vrot.slane %v939_v31, 1  ;;  %v947_v40 = vrot.slane %v946_v25, 1 }
 0x227   :  { %1146 = vst [vmem:[#allocation8] sm:$0xff] %v1136_v37  ;;  %v960_v50 = vadd.f32 %v959_v56, %v958_v41  ;;  %v927_v39 = vadd.f32 %v926_v11, %v925_v45  ;;  %v954_v58 = vrot.slane %v953_v4, 1 }
 0x228   :  { %v1444_v13 = vpop.eup %1443  ;;  %v934_v26 = vadd.f32 %v933_v2, %v932_v54  ;;  %v941_v16 = vadd.f32 %v940_v3, %v939_v31  ;;  %v948_v47 = vadd.f32 %v947_v40, %v946_v25 }
 0x229   :  { %v1101_v0 = vmul.f32 %v1881_v20, %v927_v39  ;;  %v961_v1 = vrot.slane %v960_v50, 1  ;;  %v955_v18 = vadd.f32 %v954_v58, %v953_v4 }
 0x22a   :  { %v1102_v60 = vmul.f32 %v1886_v57, %v934_v26  ;;  %v1103_v15 = vmul.f32 %v1440_v17, %v941_v16  ;;  %v1104_v28 = vmul.f32 %v1442_v36, %v948_v47 }
 0x22b   :  { %v1105_v23 = vmul.f32 %v1444_v13, %v955_v18  ;;  %v1138_v52 = vsel %vm1125_vm1, %v1101_v0, %v1137_v22  ;;  %v962_v55 = vadd.f32 %v961_v1, %v960_v50 }
 0x22c   :  { %v1139_v6 = vsel %vm1127_vm2, %v1102_v60, %v1138_v52 }
 0x22d   :  { %v1140_v38 = vsel %vm1129_vm3, %v1103_v15, %v1139_v6 }
 0x22e   :  { %v1141_v20 = vsel %vm1131_vm4, %v1104_v28, %v1140_v38 }
 0x22f   :  { %v1142_v30 = vsel %vm1133_vm5, %v1105_v23, %v1141_v20 }
 0x232   :  { %v1446_v63 = vpop.eup %1445 }
 0x233   :  { %v1106_v43 = vmul.f32 %v1446_v63, %v962_v55 }
 0x235   :  { %v1143_v57 = vsel %vm1135_vm6, %v1106_v43, %v1142_v30 }
 0x236   :  { %1147 = vst [vmem:[#allocation8 + $0x8] sm:$0xff] %v1143_v57 }
 0x237   :  { %1537 = shalt.err (!%p1534_p5)
}
 0x238   :  { %1159 = dma.vmem_to_hbm [thread:$0]  %s1154_s7, 256, %s1950_s4, [#allocation4], %s1556_s25, %s1556_s25, %s1557_s26  }
 0x239   :  { %1550 = dma.done.wait [#allocation4], 256  }
 0x23a   :  { %1551 = vsyncadd [#allocation4], 4294967040 }
 0x23b   :  { %1163 = vsyncpa [#allocation3], 1 }
 0x23c   :  { %1164 = vsyncpa [#allocation6], 1 }
 0x23d   :  { %1165 = vsyncpa [#allocation4], 1 }

</bundles_post_ra>
